<compile_context>
chip_gen: v7x
topology: tpu7x:2x2x1
jax: 0.10.0
libtpu: 0.0.40
codegen_flags: <defaults>
</compile_context>

<pallas_src>
import jax
import jax.numpy as jnp
from jax.experimental import pallas as pl
from jax.experimental.pallas import tpu as pltpu


# --------------------------------------------------------------------------- #
# Kernel
# --------------------------------------------------------------------------- #
def _residual_block_kernel(x_ref, w1_ref, b1_ref, w2_ref, b2_ref, o_ref):
    """One batch tile of the fused ResidualBlock forward (eval mode)."""
    x = x_ref[...]                                     # (tb, Dp) f32 (residual)
    xb = x.astype(jnp.bfloat16)

    # fc1 (+ folded bn1): bf16 MXU matmul, f32 accumulation, then relu.
    h = jnp.dot(xb, w1_ref[...], preferred_element_type=jnp.float32)
    h = jnp.maximum(h + b1_ref[...], 0.0)              # (1, Dp) bias broadcast

    # dropout: identity in eval mode (see TODO at top of file).

    # fc2 (+ folded bn2).
    h = jnp.dot(h.astype(jnp.bfloat16), w2_ref[...],
                preferred_element_type=jnp.float32)
    h = h + b2_ref[...]

    # residual add + relu.
    o_ref[...] = jnp.maximum(h + x, 0.0).astype(o_ref.dtype)


# --------------------------------------------------------------------------- #
# One-time parameter preparation (call once at model-load time, NOT per step)
# --------------------------------------------------------------------------- #
def fold_residual_block_params(w1, b1, gamma1, beta1, mean1, var1,
                               w2, b2, gamma2, beta2, mean2, var2, eps):
    """Fold eval-mode BatchNorm into the linear layers, pad to lane width,
    and cast weights to bf16. w1/w2 are in PyTorch (out, in) layout."""
    D = w1.shape[0]
    Dp = pl.cdiv(D, 128) * 128

    s1 = gamma1 * jax.lax.rsqrt(var1 + eps)
    t1 = beta1 - mean1 * s1
    s2 = gamma2 * jax.lax.rsqrt(var2 + eps)
    t2 = beta2 - mean2 * s2

    w1f = w1.T * s1[None, :]          # (D_in, D_out), output columns scaled
    b1f = b1 * s1 + t1
    w2f = w2.T * s2[None, :]
    b2f = b2 * s2 + t2

    pad = Dp - D
    if pad:                            # padded output columns stay exactly 0
        w1f = jnp.pad(w1f, ((0, pad), (0, pad)))
        w2f = jnp.pad(w2f, ((0, pad), (0, pad)))
        b1f = jnp.pad(b1f, ((0, pad),))
        b2f = jnp.pad(b2f, ((0, pad),))

    return (w1f.astype(jnp.bfloat16),
            b1f.reshape(1, Dp).astype(jnp.float32),
            w2f.astype(jnp.bfloat16),
            b2f.reshape(1, Dp).astype(jnp.float32))


# --------------------------------------------------------------------------- #
# Forward wrapper
# --------------------------------------------------------------------------- #
def _round_up(x, m):
    return ((x + m - 1) // m) * m


def _vmem_capacity_bytes():
    try:
        return int(pltpu.get_tpu_info().vmem_capacity_bytes)
    except Exception:
        return 128 << 20               # conservative fallback (v5e/v6e size)


def _resident_spec(shape):
    """BlockSpec for blocks with a constant index_map (never re-DMA'd):
    single pipeline buffer to halve their VMEM footprint."""
    try:
        return pl.BlockSpec(shape, lambda i: (0, 0), pipeline_mode=pl.Buffered(1))
    except TypeError:                  # older API without pipeline_mode kwarg
        return pl.BlockSpec(shape, lambda i: (0, 0))


@jax.jit
def residual_block_apply(x, w1b, b1f, w2b, b2f):
    """x: (B, D) f32. Folded/padded params from fold_residual_block_params."""
    B, D = x.shape
    Dp = w1b.shape[0]
    pad = Dp - D
    if pad:
        x = jnp.pad(x, ((0, 0), (0, pad)))

    vmem_total = _vmem_capacity_bytes()
    vmem_cap = int(0.8 * vmem_total)   # leave room for compiler-internal scratch

    def vmem_est(tb):
        return (2 * 1 * Dp * Dp * 2    # 2 bf16 weight mats, single-buffered
                + 2 * 1 * Dp * 4       # 2 f32 bias rows, single-buffered
                + 2 * 2 * tb * Dp * 4  # x tile + out tile, double-buffered f32
                + (4 << 20))           # headroom

    # Largest batch tile that fits the budget (memory-bound regime: bigger is
    # better, ~0.35 us/grid-step overhead amortized).
    tb = 8
    for cand in (1024, 512, 256, 128, 64, 32, 16, 8):
        if vmem_est(cand) <= vmem_cap:
            tb = cand
            break
    tb = min(tb, _round_up(B, 8))

    # v7x (~64 MiB VMEM, 2 TensorCores): keep >= 2 grid steps on the
    # "parallel" axis so both cores get work. No-op on v5e/v6e (single TC).
    if vmem_total <= (96 << 20) and B >= 16:
        tb = min(tb, _round_up(pl.cdiv(B, 2), 8))

    grid = (pl.cdiv(B, tb),)
    vmem_limit = int(min(max(vmem_est(tb), 16 << 20), vmem_cap))

    row_spec = pl.BlockSpec((tb, Dp), lambda i: (i, 0))   # activations per tile
    mat_spec = _resident_spec((Dp, Dp))                   # resident weights
    vec_spec = _resident_spec((1, Dp))                    # folded biases

    # TODO(synk): K/N-tiled weight path (f32 accumulator, "arbitrary" reduction
    # axis) for Dp large enough that vmem_est(8) > vmem_cap; unreachable here.

    out = pl.pallas_call(
        _residual_block_kernel,
        out_shape=jax.ShapeDtypeStruct((B, Dp), x.dtype),
        grid_spec=pl.GridSpec(
            grid=grid,
            in_specs=[row_spec, mat_spec, vec_spec, mat_spec, vec_spec],
            out_specs=row_spec,
        ),
        compiler_params=pltpu.CompilerParams(
            dimension_semantics=("parallel",),
            vmem_limit_bytes=vmem_limit),
    )(x, w1b, b1f, w2b, b2f)

    return out[:, :D] if pad else out


# --------------------------------------------------------------------------- #
# Demo / self-test
# --------------------------------------------------------------------------- #
def _xavier_uniform(key, shape, dtype=jnp.float32):
    fan_out, fan_in = shape
    bound = (6.0 / (fan_in + fan_out)) ** 0.5
    return jax.random.uniform(key, shape, dtype, minval=-bound, maxval=bound)


def _linear_bias(key, fan_in, dim, dtype=jnp.float32):
    bound = 1.0 / (fan_in ** 0.5)
    return jax.random.uniform(key, (dim,), dtype, minval=-bound, maxval=bound)


if __name__ == "__main__":
    dim, batch = 32, 8
    eps = 1e-5

    key = jax.random.PRNGKey(0)
    kx, kw1, kb1, kw2, kb2 = jax.random.split(key, 5)

    x = jax.random.normal(kx, (batch, dim), jnp.float32)

    # fc1 / fc2 parameters in PyTorch (out, in) layout.
    w1 = _xavier_uniform(kw1, (dim, dim))
    b1 = _linear_bias(kb1, dim, dim)
    w2 = _xavier_uniform(kw2, (dim, dim))
    b2 = _linear_bias(kb2, dim, dim)

    # BatchNorm1d parameters at init: gamma=1, beta=0, mean=0, var=1.
    gamma1 = jnp.ones((dim,), jnp.float32); beta1 = jnp.zeros((dim,), jnp.float32)
    mean1 = jnp.zeros((dim,), jnp.float32); var1 = jnp.ones((dim,), jnp.float32)
    gamma2 = jnp.ones((dim,), jnp.float32); beta2 = jnp.zeros((dim,), jnp.float32)
    mean2 = jnp.zeros((dim,), jnp.float32); var2 = jnp.ones((dim,), jnp.float32)

    # One-time weight folding / padding / bf16 cast (hoisted out of the forward).
    w1b, b1f, w2b, b2f = fold_residual_block_params(
        w1, b1, gamma1, beta1, mean1, var1,
        w2, b2, gamma2, beta2, mean2, var2, eps)

    out = residual_block_apply(x, w1b, b1f, w2b, b2f)
    out = jax.block_until_ready(out)

    # Pure-JAX f32 reference (eval-mode module semantics).
    s1 = gamma1 / jnp.sqrt(var1 + eps); t1 = beta1 - mean1 * s1
    s2 = gamma2 / jnp.sqrt(var2 + eps); t2 = beta2 - mean2 * s2
    h = x @ w1.T + b1
    h = h * s1 + t1
    h = jnp.maximum(h, 0.0)
    h = h @ w2.T + b2
    h = h * s2 + t2
    ref = jnp.maximum(h + x, 0.0)

    assert out.shape == (batch, dim)
    # bf16 matmul inputs (f32 accumulation) -> relaxed tolerance vs f32 reference.
    assert jnp.allclose(out, ref, atol=1e-2, rtol=1e-2), "mismatch vs reference"
    print("KERNEL_OK")
</pallas_src>

<mosaic_0001>
module attributes {stable_mosaic.version = 11 : i64} {
  func.func @_residual_block_kernel(%arg0: i32, %arg1: memref<8x128xf32, #tpu.memory_space<vmem>>, %arg2: memref<128x128xbf16, #tpu.memory_space<vmem>>, %arg3: memref<1x128xf32, #tpu.memory_space<vmem>>, %arg4: memref<128x128xbf16, #tpu.memory_space<vmem>>, %arg5: memref<1x128xf32, #tpu.memory_space<vmem>>, %arg6: memref<8x128xf32, #tpu.memory_space<vmem>>) attributes {dimension_semantics = [#tpu.dimension_semantics<parallel>], iteration_bounds = array<i64: 1>, scalar_prefetch = 0 : i64, scratch_operands = 0 : i64, tpu.core_type = #tpu.core_type<tc>, window_params = [{transform_indices = @transform_0, window_bounds = array<i64: 8, 128>}, {pipeline_mode = #tpu.pipeline_mode<synchronous>, transform_indices = @transform_1, window_bounds = array<i64: 128, 128>}, {pipeline_mode = #tpu.pipeline_mode<synchronous>, transform_indices = @transform_2, window_bounds = array<i64: 1, 128>}, {pipeline_mode = #tpu.pipeline_mode<synchronous>, transform_indices = @transform_3, window_bounds = array<i64: 128, 128>}, {pipeline_mode = #tpu.pipeline_mode<synchronous>, transform_indices = @transform_4, window_bounds = array<i64: 1, 128>}, {transform_indices = @transform_5, window_bounds = array<i64: 8, 128>}]} {
    %c0 = arith.constant 0 : index
    %c0_0 = arith.constant 0 : index
    %0 = vector.load %arg1[%c0, %c0_0] : memref<8x128xf32, #tpu.memory_space<vmem>>, vector<8x128xf32>
    %1 = arith.truncf %0 : vector<8x128xf32> to vector<8x128xbf16>
    %c0_1 = arith.constant 0 : index
    %c0_2 = arith.constant 0 : index
    %2 = vector.load %arg2[%c0_1, %c0_2] : memref<128x128xbf16, #tpu.memory_space<vmem>>, vector<128x128xbf16>
    %cst = arith.constant dense<0.000000e+00> : vector<8x128xf32>
    %3 = tpu.matmul %1, %2, %cst {dimension_numbers = #tpu.dot_dimension_numbers<[1], [0], [0], [1], [0, 0, 1, 1], [], []>} : vector<8x128xbf16>, vector<128x128xbf16>, vector<8x128xf32> -> vector<8x128xf32>
    %c0_3 = arith.constant 0 : index
    %c0_4 = arith.constant 0 : index
    %4 = vector.load %arg3[%c0_3, %c0_4] : memref<1x128xf32, #tpu.memory_space<vmem>>, vector<1x128xf32>
    %5 = vector.broadcast %4 : vector<1x128xf32> to vector<8x128xf32>
    %6 = arith.addf %3, %5 : vector<8x128xf32>
    %cst_5 = arith.constant 0.000000e+00 : f32
    %7 = vector.broadcast %cst_5 : f32 to vector<8x128xf32>
    %8 = arith.maximumf %6, %7 : vector<8x128xf32>
    %9 = arith.truncf %8 : vector<8x128xf32> to vector<8x128xbf16>
    %c0_6 = arith.constant 0 : index
    %c0_7 = arith.constant 0 : index
    %10 = vector.load %arg4[%c0_6, %c0_7] : memref<128x128xbf16, #tpu.memory_space<vmem>>, vector<128x128xbf16>
    %cst_8 = arith.constant dense<0.000000e+00> : vector<8x128xf32>
    %11 = tpu.matmul %9, %10, %cst_8 {dimension_numbers = #tpu.dot_dimension_numbers<[1], [0], [0], [1], [0, 0, 1, 1], [], []>} : vector<8x128xbf16>, vector<128x128xbf16>, vector<8x128xf32> -> vector<8x128xf32>
    %c0_9 = arith.constant 0 : index
    %c0_10 = arith.constant 0 : index
    %12 = vector.load %arg5[%c0_9, %c0_10] : memref<1x128xf32, #tpu.memory_space<vmem>>, vector<1x128xf32>
    %13 = vector.broadcast %12 : vector<1x128xf32> to vector<8x128xf32>
    %14 = arith.addf %11, %13 : vector<8x128xf32>
    %15 = arith.addf %14, %0 : vector<8x128xf32>
    %cst_11 = arith.constant 0.000000e+00 : f32
    %16 = vector.broadcast %cst_11 : f32 to vector<8x128xf32>
    %17 = arith.maximumf %15, %16 : vector<8x128xf32>
    %c0_12 = arith.constant 0 : index
    %c0_13 = arith.constant 0 : index
    %18 = vector.load %arg6[%c0_12, %c0_13] : memref<8x128xf32, #tpu.memory_space<vmem>>, vector<8x128xf32>
    tpu.vector_store %arg6[%c0_12, %c0_13], %17 {strides = array<i32>} : memref<8x128xf32, #tpu.memory_space<vmem>>, vector<8x128xf32>,
    return
  }
  func.func @transform_0(%arg0: i32) -> (i32, i32) {
    %c0_i32 = arith.constant 0 : i32
    %c0_i32_0 = arith.constant 0 : i32
    return %arg0, %c0_i32 : i32, i32
  }
  func.func @transform_1(%arg0: i32) -> (i32, i32) {
    %c0_i32 = arith.constant 0 : i32
    %c0_i32_0 = arith.constant 0 : i32
    %c0_i32_1 = arith.constant 0 : i32
    return %c0_i32, %c0_i32_0 : i32, i32
  }
  func.func @transform_2(%arg0: i32) -> (i32, i32) {
    %c0_i32 = arith.constant 0 : i32
    %c0_i32_0 = arith.constant 0 : i32
    %c0_i32_1 = arith.constant 0 : i32
    return %c0_i32, %c0_i32_0 : i32, i32
  }
  func.func @transform_3(%arg0: i32) -> (i32, i32) {
    %c0_i32 = arith.constant 0 : i32
    %c0_i32_0 = arith.constant 0 : i32
    %c0_i32_1 = arith.constant 0 : i32
    return %c0_i32, %c0_i32_0 : i32, i32
  }
  func.func @transform_4(%arg0: i32) -> (i32, i32) {
    %c0_i32 = arith.constant 0 : i32
    %c0_i32_0 = arith.constant 0 : i32
    %c0_i32_1 = arith.constant 0 : i32
    return %c0_i32, %c0_i32_0 : i32, i32
  }
  func.func @transform_5(%arg0: i32) -> (i32, i32) {
    %c0_i32 = arith.constant 0 : i32
    %c0_i32_0 = arith.constant 0 : i32
    return %arg0, %c0_i32 : i32, i32
  }
}

</mosaic_0001>

<bundles_post_ra>
// kernel: residual_block_apply.1
= control target key start
LH: loop header
LB: loop body
LE: loop exit
PB: predicated region body
PF: predicated region fallthrough
CT: control target
= control target key end

     0   :  { %10 = vsyncpa [#allocation3], 0  ;;  %s548_s0 = inlined_call_operand.vmem [shape: f32[8,128], index: 0, kind: input, shape index: {}]   ;;  %s549_s1 = inlined_call_operand.hbm [shape: bf16[128,128], index: 1, kind: input, shape index: {}]   ;;  %s550_s2 = inlined_call_operand.vmem [shape: f32[1,128], index: 2, kind: input, shape index: {}]   ;;  %s551_s3 = inlined_call_operand.hbm [shape: bf16[128,128], index: 3, kind: input, shape index: {}]   ;;  %s552_s4 = inlined_call_operand.vmem [shape: f32[1,128], index: 4, kind: input, shape index: {}]   ;;  %s553_s5 = inlined_call_operand.hbm [shape: f32[8,128], index: 5, kind: output, shape index: {}]  }
   0x1   :  { %11 = vsyncpa [#allocation6], 0 }
   0x2   :  { %12 = vsyncpa [#allocation4], 0  ;;  %s466_s18 = smov [#allocation2]   ;;  %s394_s22 = scalar_lea.hbm %s549_s1, 1024 }
   0x3   :  { %s20_s19 = sshll.u32 %s466_s18, 4  ;;  %p395_p0 = scmp.ne.s32.totalorder %s549_s1, %s394_s22  ;;  %s21_s19 = int_to_ptr.vmem [resolvable:$true] %s20_s19 }
   0x4   :  { %p398_p1 = scmp.lt.u32.totalorder %s394_s22, %s549_s1 }
   0x6   :  { %p400_p2 = pnand %p398_p1, %p395_p0 }
   0x8   :  { %403 = shalt.err (!%p400_p2)
}
   0x9   :  { %s404_s27 = scalar_lea.vmem %s21_s19, 1024  ;;  %p409_p4 = scmp.lt.s32.totalorder %s21_s19, %s21_s19 }
   0xa   :  { %p405_p3 = scmp.ne.s32.totalorder %s21_s19, %s404_s27  ;;  %p410_p5 = scmp.lt.s32.totalorder %s404_s27, %s404_s27 }
   0xc   :  { %p411_p6 = por %p410_p5, %p409_p4 }
   0xe   :  { %p412_p7 = pnand %p411_p6, %p405_p3 }
  0x10   :  { %415 = shalt.err (!%p412_p7)
}
  0x11   :  { %s467_s28 = smov 64   ;;  %s468_s29 = smov 4  }
  0x12   :  { %26 = dma.hbm_to_vmem [thread:$0]  %s549_s1, 1024, %s21_s19, [#allocation3], %s467_s28, %s467_s28, %s468_s29  }
  0x13   :  { %s469_s7 = smov [#allocation5]   ;;  %s416_s11 = scalar_lea.hbm %s551_s3, 1024 }
  0x14   :  { %s34_s8 = sshll.u32 %s469_s7, 4  ;;  %p417_p8 = scmp.ne.s32.totalorder %s551_s3, %s416_s11  ;;  %s35_s8 = int_to_ptr.vmem [resolvable:$true] %s34_s8 }
  0x15   :  { %p420_p9 = scmp.lt.u32.totalorder %s416_s11, %s551_s3 }
  0x17   :  { %p422_p10 = pnand %p420_p9, %p417_p8 }
  0x19   :  { %425 = shalt.err (!%p422_p10)
}
  0x1a   :  { %s426_s16 = scalar_lea.vmem %s35_s8, 1024  ;;  %p431_p12 = scmp.lt.s32.totalorder %s35_s8, %s35_s8 }
  0x1b   :  { %p427_p11 = scmp.ne.s32.totalorder %s35_s8, %s426_s16  ;;  %p432_p13 = scmp.lt.s32.totalorder %s426_s16, %s426_s16 }
  0x1d   :  { %p433_p0 = por %p432_p13, %p431_p12 }
  0x1f   :  { %p434_p1 = pnand %p433_p0, %p427_p11 }
  0x21   :  { %437 = shalt.err (!%p434_p1)
}
  0x22   :  { %40 = dma.hbm_to_vmem [thread:$0]  %s551_s3, 1024, %s35_s8, [#allocation6], %s467_s28, %s467_s28, %s468_s29  }
  0x23   :  { %460 = dma.done.wait [#allocation3], 1024  }
  0x24   :  { %461 = vsyncadd [#allocation3], 4294966272 }
  0x25   :  { %462 = dma.done.wait [#allocation6], 1024  }
  0x26   :  { %463 = vsyncadd [#allocation6], 4294966272  ;;  %v470_v0 = vmov 0.0   ;;  %vm471_vm0 = vmmov 0   ;;  %v378_v1 = vld [vmem:[#allocation2] sm:$0xff]   ;;  %v379_v2 = vld [vmem:[#allocation2 + $0x8] sm:$0xff]  }
  0x27   :  { %331 = vmatprep.subr.bf16.mxu0 %v470_v0  ;;  %347 = vmatprep.mubr.msk.bf16.mxu0 %vm471_vm0, %v470_v0  ;;  %v380_v3 = vld [vmem:[#allocation2 + $0x10] sm:$0xff]   ;;  %v386_v4 = vld [vmem:[#allocation5] sm:$0xff]   ;;  %v381_v5 = vld [vmem:[#allocation2 + $0x18] sm:$0xff]   ;;  %s472_s22 = smov [#allocation7]  }
  0x28   :  { %351 = vmatprep.subr.bf16.mxu1 %v470_v0  ;;  %367 = vmatprep.mubr.msk.bf16.mxu1 %vm471_vm0, %v470_v0  ;;  %v387_v6 = vld [vmem:[#allocation5 + $0x8] sm:$0xff]   ;;  %v382_v7 = vld [vmem:[#allocation2 + $0x20] sm:$0xff]   ;;  %v388_v8 = vld [vmem:[#allocation5 + $0x10] sm:$0xff]   ;;  %s285_s23 = sshll.u32 %s472_s22, 4  ;;  %s286_s23 = int_to_ptr.vmem [resolvable:$true] %s285_s23 }
  0x29   :  { %332 = vmatpush3.bf16.msra.mxu0 %v378_v1  ;;  %352 = vmatpush3.bf16.msra.mxu1 %v386_v4  ;;  %v383_v9 = vld [vmem:[#allocation2 + $0x28] sm:$0xff]   ;;  %v389_v10 = vld [vmem:[#allocation5 + $0x18] sm:$0xff]   ;;  %v384_v11 = vld [vmem:[#allocation2 + $0x30] sm:$0xff]   ;;  %p443_p3 = scmp.lt.s32.totalorder %s286_s23, %s286_s23 }
  0x2a   :  { %333 = vmatprep.subr.bf16.mxu0 %v470_v0  ;;  %353 = vmatprep.subr.bf16.mxu1 %v470_v0  ;;  %v390_v12 = vld [vmem:[#allocation5 + $0x20] sm:$0xff]   ;;  %v385_v13 = vld [vmem:[#allocation2 + $0x38] sm:$0xff]   ;;  %v391_v15 = vld [vmem:[#allocation5 + $0x28] sm:$0xff]  }
  0x2b   :  { %v50_v14 = vld [vmem:[%s548_s0] sm:$0xff]  ;;  %v392_v17 = vld [vmem:[#allocation5 + $0x30] sm:$0xff]  }
  0x2c   :  { %v51_v16 = vpack.c.bf16 %v50_v14, %v50_v14  ;;  %v393_v18 = vld [vmem:[#allocation5 + $0x38] sm:$0xff]  }
  0x2d   :  { %334 = vmatpush3.bf16.msra.mxu0 %v379_v2  ;;  %354 = vmatpush3.bf16.msra.mxu1 %v387_v6  ;;  %v295_v19 = vld [vmem:[%s550_s2] ss:$0 sm:$0xff]  ;;  %s438_s2 = scalar_lea.vmem %s286_s23, 128 }
  0x2e   :  { %335 = vmatprep.subr.bf16.mxu0 %v470_v0  ;;  %355 = vmatprep.subr.bf16.mxu1 %v470_v0  ;;  %v304_v27 = vld [vmem:[%s552_s4] ss:$0 sm:$0xff]  ;;  %p439_p2 = scmp.ne.s32.totalorder %s286_s23, %s438_s2  ;;  %p444_p4 = scmp.lt.s32.totalorder %s438_s2, %s438_s2 }
  0x30   :  { %p445_p5 = por %p444_p4, %p443_p3 }
  0x31   :  { %336 = vmatpush3.bf16.msra.mxu0 %v380_v3  ;;  %356 = vmatpush3.bf16.msra.mxu1 %v388_v8 }
  0x32   :  { %337 = vmatprep.subr.bf16.mxu0 %v470_v0  ;;  %357 = vmatprep.subr.bf16.mxu1 %v470_v0  ;;  %p446_p6 = pnand %p445_p5, %p439_p2 }
  0x35   :  { %338 = vmatpush3.bf16.msra.mxu0 %v381_v5  ;;  %358 = vmatpush3.bf16.msra.mxu1 %v389_v10 }
  0x36   :  { %339 = vmatprep.subr.bf16.mxu0 %v470_v0  ;;  %359 = vmatprep.subr.bf16.mxu1 %v470_v0 }
  0x39   :  { %340 = vmatpush3.bf16.msra.mxu0 %v382_v7  ;;  %360 = vmatpush3.bf16.msra.mxu1 %v390_v12 }
  0x3a   :  { %341 = vmatprep.subr.bf16.mxu0 %v470_v0  ;;  %361 = vmatprep.subr.bf16.mxu1 %v470_v0 }
  0x3d   :  { %342 = vmatpush3.bf16.msra.mxu0 %v383_v9  ;;  %362 = vmatpush3.bf16.msra.mxu1 %v391_v15 }
  0x3e   :  { %343 = vmatprep.subr.bf16.mxu0 %v470_v0  ;;  %363 = vmatprep.subr.bf16.mxu1 %v470_v0 }
  0x41   :  { %344 = vmatpush3.bf16.msra.mxu0 %v384_v11  ;;  %364 = vmatpush3.bf16.msra.mxu1 %v392_v17 }
  0x42   :  { %345 = vmatprep.subr.bf16.mxu0 %v470_v0  ;;  %365 = vmatprep.subr.bf16.mxu1 %v470_v0 }
  0x45   :  { %346 = vmatpush3.bf16.msra.mxu0 %v385_v13  ;;  %366 = vmatpush3.bf16.msra.mxu1 %v393_v18 }
  0x48   :  { %348 = vmatmul.mubr.bf16.vlgmr.msra.gmra.mrb[0].mxu0 %v51_v16 }
 0x11b   :  { %v157_v20 = vpop.f32.mrb[0].mxu0 }
 0x11c   :  { %v158_v21 = vadd.f32 %v295_v19, %v157_v20  ;;  %v349_v22 = vpop.f32.mrb[1].mxu0 }
 0x11d   :  { %v160_v23 = vpop.f32.mrb[2].mxu0 }
 0x11e   :  { %v163_v24 = vmax.f32 %v158_v21, 0.0  ;;  %v350_v25 = vpop.f32.mrb[3].mxu0 }
 0x120   :  { %v164_v26 = vpack.c.bf16 %v163_v24, %v163_v24 }
 0x122   :  { %368 = vmatmul.mubr.bf16.vlgmr.msra.gmra.mrb[0].mxu1 %v164_v26 }
 0x1f5   :  { %v270_v28 = vpop.f32.mrb[0].mxu1 }
 0x1f6   :  { %v271_v29 = vadd.f32 %v304_v27, %v270_v28  ;;  %v369_v30 = vpop.f32.mrb[1].mxu1 }
 0x1f7   :  { %v273_v31 = vpop.f32.mrb[2].mxu1 }
 0x1f8   :  { %v276_v32 = vadd.f32 %v271_v29, %v50_v14  ;;  %v370_v33 = vpop.f32.mrb[3].mxu1 }
 0x1fa   :  { %v277_v34 = vmax.f32 %v276_v32, 0.0 }
 0x1fc   :  { %278 = vst [vmem:[#allocation7] sm:$0xff] %v277_v34 }
 0x1fd   :  { %449 = shalt.err (!%p446_p6)
}
 0x1fe   :  { %s450_s25 = scalar_lea.hbm %s553_s5, 128 }
 0x1ff   :  { %p451_p7 = scmp.ne.s32.totalorder %s553_s5, %s450_s25  ;;  %p454_p8 = scmp.lt.u32.totalorder %s450_s25, %s553_s5 }
 0x201   :  { %p456_p9 = pnand %p454_p8, %p451_p7 }
 0x203   :  { %459 = shalt.err (!%p456_p9)
}
 0x204   :  { %288 = dma.vmem_to_hbm [thread:$0]  %s286_s23, 128, %s553_s5, [#allocation4]  }
 0x205   :  { %464 = dma.done.wait [#allocation4], 128  }
 0x206   :  { %465 = vsyncadd [#allocation4], 4294967168 }
 0x207   :  { %292 = vsyncpa [#allocation3], 1 }
 0x208   :  { %293 = vsyncpa [#allocation6], 1 }
 0x209   :  { %294 = vsyncpa [#allocation4], 1 }

</bundles_post_ra>
